<compile_context>
chip_gen: v7x
topology: tpu7x:2x2x1
jax: 0.10.0
libtpu: 0.0.40
codegen_flags: <defaults>
</compile_context>

<pallas_src>
import jax
import jax.numpy as jnp
import numpy as np
from jax.experimental import pallas as pl
from jax.experimental.pallas import tpu as pltpu


TARGET_BLOCK_BYTES = 4 * 1024 * 1024   # ~4 MiB f32 block (per grid step)
VMEM_LIMIT_BYTES = 48 * 1024 * 1024    # headroom for double-buffered in + out


def _round_up(x, m):
    return ((x + m - 1) // m) * m


def _sublane_multiple(dtype):
    itemsize = jnp.dtype(dtype).itemsize
    return {8: 8, 4: 8, 2: 16, 1: 32}.get(itemsize, 8)


def make_holiday_kernel(holiday, repeat_every=365, mean=0.0, scale=1.0):
    """Returns forward(t, w) == (remainder(t - holiday', repeat') == 0) * w."""
    if float(scale) == 0.0:
        raise ValueError("scale must be nonzero")
    # NOTE: constants are formed in Python float64 then truncated to f32; this
    # matches a torch module whose buffers end up in f32 for typical values.
    holiday_c = (float(holiday) - float(mean)) / float(scale)
    repeat_c = float(repeat_every) / float(scale)
    if repeat_c == 0.0:
        raise ValueError("repeat_every/scale must be nonzero (remainder by 0)")

    def kernel(w_ref, t_ref, o_ref):
        # Upcast in-kernel on the VMEM tile (no wrapper-side HBM cast pass).
        t = t_ref[...].astype(jnp.float32)
        # torch.remainder semantics (sign follows divisor) == jnp.remainder.
        rem = jnp.remainder(t - jnp.float32(holiday_c), jnp.float32(repeat_c))
        w = w_ref[0, 0]
        # Single vselect instead of bool->f32 cast + multiply.
        o_ref[...] = jnp.where(rem == 0.0, w, jnp.float32(0.0))

    def forward(t, w):
        orig_shape = t.shape
        n = int(t.size)

        flat = t.reshape(-1)  # contiguous reshape: free, no HBM copy

        # Lane-dense slab without padding whenever possible.
        if n % 512 == 0:
            lane = 512
        elif n % 256 == 0:
            lane = 256
        elif n % 128 == 0:
            lane = 128
        else:
            lane = 512  # padding needed; pad amount doesn't change copy cost
        rows = pl.cdiv(n, lane)
        padded = rows * lane
        if padded != n:
            flat = jnp.pad(flat, (0, padded - n))
        slab = flat.reshape(rows, lane)

        # Block rows: dtype-aware sublane multiple; aim for >= 2 blocks so the
        # parallel grid axis can use both v7x TensorCores; cap at ~4 MiB.
        sub = _sublane_multiple(t.dtype)
        max_block_rows = max(sub, (TARGET_BLOCK_BYTES // (lane * 4)) // sub * sub)
        if rows <= sub:
            block_rows = rows                      # full-extent block (tiny input)
        else:
            half = _round_up(pl.cdiv(rows, 2), sub)
            block_rows = max(sub, min(max_block_rows, half))
        num_blocks = pl.cdiv(rows, block_rows)     # ragged last block is fine

        w_arr = jnp.reshape(w, (1, 1)).astype(jnp.float32)

        out = pl.pallas_call(
            kernel,
            out_shape=jax.ShapeDtypeStruct((rows, lane), jnp.float32),
            grid_spec=pltpu.PrefetchScalarGridSpec(
                num_scalar_prefetch=0,
                grid=(num_blocks,),
                in_specs=[
                    pl.BlockSpec((1, 1), lambda i: (0, 0),
                                 memory_space=pltpu.MemorySpace.SMEM),
                    pl.BlockSpec((block_rows, lane), lambda i: (i, 0)),
                ],
                out_specs=pl.BlockSpec((block_rows, lane), lambda i: (i, 0)),
            ),
            compiler_params=pltpu.CompilerParams(
                dimension_semantics=("parallel",),
                vmem_limit_bytes=VMEM_LIMIT_BYTES,
            ),
        )(w_arr, slab)

        if padded != n:
            return out.reshape(-1)[:n].reshape(orig_shape)
        return out.reshape(orig_shape)

    return forward


if __name__ == "__main__":
    # Deterministic parameter init (matches nn.Parameter(torch.zeros(1) + 0.05)).
    w = jnp.array([0.05], dtype=jnp.float32)

    holiday = 10.0
    repeat_every = 365.0
    mean, scale = 0.0, 1.0

    # Integer-valued times so some remainders are exactly 0.
    key = jax.random.PRNGKey(0)
    t = jax.random.randint(key, (32, 128), minval=0, maxval=1000).astype(jnp.float32)
    # Force a few exact holiday hits.
    t = t.at[0, 0].set(holiday)
    t = t.at[3, 7].set(holiday + repeat_every)
    t = t.at[5, 100].set(holiday + 2 * repeat_every)
    t = t.at[17, 63].set(holiday + 3 * repeat_every)

    fwd = make_holiday_kernel(holiday, repeat_every, mean, scale)
    out = jax.block_until_ready(fwd(t, w))

    # Pure-JAX reference (same remainder formulation -> identical hit set).
    ref = (jnp.remainder(t - (holiday - mean) / scale, repeat_every / scale) == 0
           ).astype(jnp.float32) * w[0]

    assert out.shape == t.shape and out.dtype == jnp.float32
    np.testing.assert_allclose(np.asarray(out), np.asarray(ref), rtol=0, atol=1e-7)

    # Holiday hits carry the weight. Compare against float32(0.05), NOT the
    # Python double 0.05 (float32(0.05) == 0.05000000074505806).
    w32 = float(np.float32(0.05))
    for (i, j) in [(0, 0), (3, 7), (5, 100), (17, 63)]:
        assert abs(float(out[i, j]) - w32) < 1e-7, f"holiday hit missed at {(i, j)}"
    # And non-hits are exactly zero somewhere (sanity on the select path).
    assert float(jnp.min(out)) == 0.0

    print("KERNEL_OK")
</pallas_src>

<mosaic_0001>
module attributes {stable_mosaic.version = 11 : i64} {
  func.func @kernel(%arg0: i32, %arg1: memref<1x1xf32, #tpu.memory_space<smem>>, %arg2: memref<8x512xf32, #tpu.memory_space<vmem>>, %arg3: memref<8x512xf32, #tpu.memory_space<vmem>>) attributes {dimension_semantics = [#tpu.dimension_semantics<parallel>], iteration_bounds = array<i64: 1>, scalar_prefetch = 0 : i64, scratch_operands = 0 : i64, tpu.core_type = #tpu.core_type<tc>, window_params = [{transform_indices = @transform_0, window_bounds = array<i64: 1, 1>}, {transform_indices = @transform_1, window_bounds = array<i64: 8, 512>}, {transform_indices = @transform_2, window_bounds = array<i64: 8, 512>}]} {
    %c0 = arith.constant 0 : index
    %c0_0 = arith.constant 0 : index
    %0 = vector.load %arg2[%c0, %c0_0] : memref<8x512xf32, #tpu.memory_space<vmem>>, vector<8x512xf32>
    %cst = arith.constant 1.000000e+01 : f32
    %1 = vector.broadcast %cst : f32 to vector<8x512xf32>
    %2 = arith.subf %0, %1 : vector<8x512xf32>
    %cst_1 = arith.constant 3.650000e+02 : f32
    %3 = vector.broadcast %cst_1 : f32 to vector<8x512xf32>
    %4 = arith.remf %2, %3 : vector<8x512xf32>
    %cst_2 = arith.constant 0.000000e+00 : f32
    %5 = vector.broadcast %cst_2 : f32 to vector<8x512xf32>
    %6 = arith.cmpf one, %4, %5 : vector<8x512xf32>
    %cst_3 = arith.constant 0.000000e+00 : f32
    %7 = vector.broadcast %cst_3 : f32 to vector<8x512xf32>
    %8 = arith.cmpf olt, %4, %7 : vector<8x512xf32>
    %cst_4 = arith.constant 0.000000e+00 : f32
    %9 = arith.cmpf olt, %cst_1, %cst_4 : f32
    %10 = vector.broadcast %9 : i1 to vector<8x512xi1>
    %11 = vector.broadcast %10 : vector<8x512xi1> to vector<8x512xi1>
    %12 = arith.xori %8, %11 : vector<8x512xi1>
    %13 = arith.andi %12, %6 : vector<8x512xi1>
    %14 = vector.broadcast %cst_1 : f32 to vector<8x512xf32>
    %15 = arith.addf %4, %14 : vector<8x512xf32>
    %16 = arith.select %13, %15, %4 : vector<8x512xi1>, vector<8x512xf32>
    %c0_5 = arith.constant 0 : index
    %c0_6 = arith.constant 0 : index
    %17 = memref.load %arg1[%c0_5, %c0_6] : memref<1x1xf32, #tpu.memory_space<smem>>
    %cst_7 = arith.constant 0.000000e+00 : f32
    %18 = vector.broadcast %cst_7 : f32 to vector<8x512xf32>
    %19 = arith.cmpf oeq, %16, %18 : vector<8x512xf32>
    %cst_8 = arith.constant 0.000000e+00 : f32
    %20 = vector.broadcast %17 : f32 to vector<8x512xf32>
    %21 = vector.broadcast %cst_8 : f32 to vector<8x512xf32>
    %22 = arith.select %19, %20, %21 : vector<8x512xi1>, vector<8x512xf32>
    %c0_9 = arith.constant 0 : index
    %c0_10 = arith.constant 0 : index
    %23 = vector.load %arg3[%c0_9, %c0_10] : memref<8x512xf32, #tpu.memory_space<vmem>>, vector<8x512xf32>
    tpu.vector_store %arg3[%c0_9, %c0_10], %22 {strides = array<i32>} : memref<8x512xf32, #tpu.memory_space<vmem>>, vector<8x512xf32>,
    return
  }
  func.func @transform_0(%arg0: i32) -> (i32, i32) {
    %c0_i32 = arith.constant 0 : i32
    %c0_i32_0 = arith.constant 0 : i32
    %c0_i32_1 = arith.constant 0 : i32
    return %c0_i32, %c0_i32_0 : i32, i32
  }
  func.func @transform_1(%arg0: i32) -> (i32, i32) {
    %c0_i32 = arith.constant 0 : i32
    %c0_i32_0 = arith.constant 0 : i32
    return %arg0, %c0_i32 : i32, i32
  }
  func.func @transform_2(%arg0: i32) -> (i32, i32) {
    %c0_i32 = arith.constant 0 : i32
    %c0_i32_0 = arith.constant 0 : i32
    return %arg0, %c0_i32 : i32, i32
  }
}

</mosaic_0001>

<bundles_post_ra>
// kernel: tpu_custom_call.1
= control target key start
LH: loop header
LB: loop body
LE: loop exit
PB: predicated region body
PF: predicated region fallthrough
CT: control target
= control target key end

     0   :  { %8 = vsyncpa [#allocation4], 0  ;;  %s224_s0 = inlined_call_operand.<no memory space> [shape: f32[1,1], index: 0, kind: input, shape index: {}]   ;;  %s225_s1 = inlined_call_operand.hbm [shape: f32[8,512], index: 1, kind: input, shape index: {}]   ;;  %s226_s2 = inlined_call_operand.hbm [shape: f32[8,512], index: 2, kind: output, shape index: {}]  }
   0x1   :  { %9 = vsyncpa [#allocation5], 0  ;;  %s180_s9 = smov [#allocation3]   ;;  %s132_s13 = scalar_lea.hbm %s225_s1, 512 }
   0x2   :  { %s18_s10 = sshll.u32 %s180_s9, 4  ;;  %p133_p0 = scmp.ne.s32.totalorder %s225_s1, %s132_s13  ;;  %s19_s10 = int_to_ptr.vmem [resolvable:$true] %s18_s10 }
   0x3   :  { %p136_p1 = scmp.lt.u32.totalorder %s132_s13, %s225_s1 }
   0x5   :  { %p138_p2 = pnand %p136_p1, %p133_p0 }
   0x7   :  { %141 = shalt.err (!%p138_p2)
}
   0x8   :  { %s142_s18 = scalar_lea.vmem %s19_s10, 512  ;;  %p147_p4 = scmp.lt.s32.totalorder %s19_s10, %s19_s10 }
   0x9   :  { %p143_p3 = scmp.ne.s32.totalorder %s19_s10, %s142_s18  ;;  %p148_p5 = scmp.lt.s32.totalorder %s142_s18, %s142_s18 }
   0xb   :  { %p149_p6 = por %p148_p5, %p147_p4 }
   0xd   :  { %p150_p7 = pnand %p149_p6, %p143_p3 }
   0xf   :  { %153 = shalt.err (!%p150_p7)
}
  0x10   :  { %21 = dma.hbm_to_vmem [thread:$0]  %s225_s1, 512, %s19_s10, [#allocation4]  }
  0x11   :  { %176 = dma.done.wait [#allocation4], 512  }
  0x12   :  { %177 = vsyncadd [#allocation4], 4294966784  ;;  %v25_v0 = vld [vmem:[#allocation3] sm:$0xff]  ;;  %v26_v1 = vld [vmem:[#allocation3 + $0x8] sm:$0xff]  ;;  %v102_v42 = vstv %s224_s0  ;;  %s181_s0 = smov [#allocation6]  }
  0x13   :  { %v27_v2 = vld [vmem:[#allocation3 + $0x10] sm:$0xff]  ;;  %v126_v3 = vadd.f32 -10.0, %v25_v0  ;;  %v127_v4 = vadd.f32 -10.0, %v26_v1  ;;  %v28_v6 = vld [vmem:[#allocation3 + $0x18] sm:$0xff]  ;;  %s117_s22 = sshll.u32 %s181_s0, 4  ;;  %s118_s22 = int_to_ptr.vmem [resolvable:$true] %s117_s22 }
  0x14   :  { %v128_v5 = vadd.f32 -10.0, %v27_v2  ;;  %v129_v7 = vadd.f32 -10.0, %v28_v6  ;;  %s154_s23 = scalar_lea.vmem %s118_s22, 512  ;;  %p159_p9 = scmp.lt.s32.totalorder %s118_s22, %s118_s22 }
  0x15   :  { %v33_v8 = vand.u32 2147483647, %v126_v3  ;;  %v44_v9 = vand.u32 2147483647, %v127_v4  ;;  %v42_v26 = vand.u32 2147483648, %v126_v3  ;;  %v53_v27 = vand.u32 2147483648, %v127_v4  ;;  %p155_p8 = scmp.ne.s32.totalorder %s118_s22, %s154_s23  ;;  %p160_p10 = scmp.lt.s32.totalorder %s154_s23, %s154_s23 }
  0x16   :  { %v55_v10 = vand.u32 2147483647, %v128_v5  ;;  %v66_v11 = vand.u32 2147483647, %v129_v7  ;;  %v64_v30 = vand.u32 2147483648, %v128_v5  ;;  %v75_v31 = vand.u32 2147483648, %v129_v7 }
  0x17   :  { %v35_v12 = vmul.f32 0.002739726, %v33_v8  ;;  %v46_v13 = vmul.f32 0.002739726, %v44_v9  ;;  %p161_p11 = por %p160_p10, %p159_p9 }
  0x18   :  { %v57_v14 = vmul.f32 0.002739726, %v55_v10  ;;  %v68_v15 = vmul.f32 0.002739726, %v66_v11 }
  0x19   :  { %v36_v16 = vfloor.f32 %v35_v12  ;;  %v47_v17 = vfloor.f32 %v46_v13  ;;  %p162_p12 = pnand %p161_p11, %p155_p8 }
  0x1a   :  { %v58_v18 = vfloor.f32 %v57_v14  ;;  %v69_v19 = vfloor.f32 %v68_v15 }
  0x1b   :  { %v37_v20 = vmul.f32 365.0, %v36_v16  ;;  %v48_v21 = vmul.f32 365.0, %v47_v17 }
  0x1c   :  { %v59_v22 = vmul.f32 365.0, %v58_v18  ;;  %v70_v23 = vmul.f32 365.0, %v69_v19 }
  0x1d   :  { %v38_v24 = vsub.f32 %v33_v8, %v37_v20  ;;  %v49_v25 = vsub.f32 %v44_v9, %v48_v21 }
  0x1e   :  { %v60_v28 = vsub.f32 %v55_v10, %v59_v22  ;;  %v71_v29 = vsub.f32 %v66_v11, %v70_v23 }
  0x1f   :  { %vm39_vm0 = vcmp.eq.f32.partialorder %v38_v24, 365.0  ;;  %vm50_vm1 = vcmp.eq.f32.partialorder %v49_v25, 365.0 }
  0x20   :  { %v40_v32 = vsel %vm39_vm0, 0.0, %v38_v24  ;;  %v51_v33 = vsel %vm50_vm1, 0.0, %v49_v25  ;;  %vm61_vm2 = vcmp.eq.f32.partialorder %v60_v28, 365.0  ;;  %vm72_vm3 = vcmp.eq.f32.partialorder %v71_v29, 365.0 }
  0x21   :  { %v41_v34 = vand.u32 2147483647, %v40_v32  ;;  %v52_v35 = vand.u32 2147483647, %v51_v33  ;;  %v62_v36 = vsel %vm61_vm2, 0.0, %v60_v28  ;;  %v73_v37 = vsel %vm72_vm3, 0.0, %v71_v29 }
  0x22   :  { %v63_v38 = vand.u32 2147483647, %v62_v36  ;;  %v74_v39 = vand.u32 2147483647, %v73_v37 }
  0x23   :  { %v43_v40 = vor.u32 %v42_v26, %v41_v34  ;;  %v54_v41 = vor.u32 %v53_v27, %v52_v35 }
  0x24   :  { %v65_v43 = vor.u32 %v64_v30, %v63_v38  ;;  %v76_v44 = vor.u32 %v75_v31, %v74_v39 }
  0x25   :  { %vm77_vm4 = vcmp.ne.f32.partialorder %v43_v40, 0.0  ;;  %vm81_vm5 = vcmp.lt.f32.partialorder %v43_v40, 0.0  ;;  %v89_v45 = vadd.f32 365.0, %v43_v40  ;;  %vm78_vm6 = vcmp.ne.f32.partialorder %v54_v41, 0.0 }
  0x26   :  { %vm85_vm7 = vmand %vm81_vm5, %vm77_vm4  ;;  %vm82_vm8 = vcmp.lt.f32.partialorder %v54_v41, 0.0  ;;  %v90_v46 = vadd.f32 365.0, %v54_v41  ;;  %vm79_vm9 = vcmp.ne.f32.partialorder %v65_v43, 0.0  ;;  %vm83_vm10 = vcmp.lt.f32.partialorder %v65_v43, 0.0 }
  0x27   :  { %v93_v47 = vsel %vm85_vm7, %v89_v45, %v43_v40  ;;  %vm86_vm11 = vmand %vm82_vm8, %vm78_vm6  ;;  %v91_v48 = vadd.f32 365.0, %v65_v43  ;;  %vm80_vm12 = vcmp.ne.f32.partialorder %v76_v44, 0.0  ;;  %vm84_vm13 = vcmp.lt.f32.partialorder %v76_v44, 0.0 }
  0x28   :  { %vm98_vm14 = vcmp.eq.f32.partialorder %v93_v47, 0.0  ;;  %v94_v49 = vsel %vm86_vm11, %v90_v46, %v54_v41  ;;  %vm87_vm15 = vmand %vm83_vm10, %vm79_vm9  ;;  %v92_v50 = vadd.f32 365.0, %v76_v44 }
  0x29   :  { %v103_v51 = vsel %vm98_vm14, %v102_v42, 0.0  ;;  %vm99_vm0 = vcmp.eq.f32.partialorder %v94_v49, 0.0  ;;  %v95_v52 = vsel %vm87_vm15, %v91_v48, %v65_v43  ;;  %vm88_vm1 = vmand %vm84_vm13, %vm80_vm12 }
  0x2a   :  { %107 = vst [vmem:[#allocation6] sm:$0xff] %v103_v51  ;;  %v104_v53 = vsel %vm99_vm0, %v102_v42, 0.0  ;;  %vm100_vm2 = vcmp.eq.f32.partialorder %v95_v52, 0.0  ;;  %v96_v54 = vsel %vm88_vm1, %v92_v50, %v76_v44 }
  0x2b   :  { %108 = vst [vmem:[#allocation6 + $0x8] sm:$0xff] %v104_v53  ;;  %v105_v55 = vsel %vm100_vm2, %v102_v42, 0.0  ;;  %vm101_vm3 = vcmp.eq.f32.partialorder %v96_v54, 0.0 }
  0x2c   :  { %109 = vst [vmem:[#allocation6 + $0x10] sm:$0xff] %v105_v55  ;;  %v106_v56 = vsel %vm101_vm3, %v102_v42, 0.0 }
  0x2d   :  { %110 = vst [vmem:[#allocation6 + $0x18] sm:$0xff] %v106_v56 }
  0x2e   :  { %165 = shalt.err (!%p162_p12)
}
  0x2f   :  { %s166_s26 = scalar_lea.hbm %s226_s2, 512 }
  0x30   :  { %p167_p13 = scmp.ne.s32.totalorder %s226_s2, %s166_s26  ;;  %p170_p0 = scmp.lt.u32.totalorder %s166_s26, %s226_s2 }
  0x32   :  { %p172_p1 = pnand %p170_p0, %p167_p13 }
  0x34   :  { %175 = shalt.err (!%p172_p1)
}
  0x35   :  { %120 = dma.vmem_to_hbm [thread:$0]  %s118_s22, 512, %s226_s2, [#allocation5]  }
  0x36   :  { %178 = dma.done.wait [#allocation5], 512  }
  0x37   :  { %179 = vsyncadd [#allocation5], 4294966784 }
  0x38   :  { %124 = vsyncpa [#allocation4], 1 }
  0x39   :  { %125 = vsyncpa [#allocation5], 1 }

</bundles_post_ra>
